<compile_context>
chip_gen: v7x
topology: tpu7x:2x2x1
jax: 0.10.0
libtpu: 0.0.40
codegen_flags: <defaults>
</compile_context>

<pallas_src>
import functools

import jax
import jax.numpy as jnp
from jax.experimental import pallas as pl
from jax.experimental.pallas import tpu as pltpu

_BN_EPS = 1e-5


def _vmem_limit_bytes():
    """Generation-aware VMEM budget: ~48 MiB on v7x (64 MiB phys), ~96 MiB on v5e/v6e."""
    try:
        cap = pltpu.get_tpu_info().vmem_capacity_bytes
    except Exception:  # conservative fallback: assume the smallest generation (v7x, 64 MiB)
        cap = 64 * 1024 * 1024
    return int(min(max(cap - 16 * 1024 * 1024, 32 * 1024 * 1024), 96 * 1024 * 1024))


def _pick_lane_tile(length, c_in, c_out, x_itemsize, vmem_budget, lane_tile):
    """Largest 128-multiple lane tile that fits the VMEM budget (capped at 2048)."""
    if length < 128:
        return length  # full-length block (legal: equals the array dim); tiny case
    if lane_tile is None:
        # double-buffered x-input tile + double-buffered f32 output tile; keep ~50% headroom
        per_lane = 2 * c_in * x_itemsize + 2 * c_out * 4
        lane_tile = (vmem_budget // 2) // per_lane
    lane_tile = max(128, (min(2048, int(lane_tile)) // 128) * 128)
    # Never larger than the biggest 128-multiple <= length (boundary tile may still be
    # partial; stats mask it and OOB output columns are dropped).
    return min(lane_tile, (length // 128) * 128)


def _stats_kernel(x_ref, out_ref, *, length, c_in, compute_dtype):
    # x_ref:   [C_in, TL]      activations for one (batch, length-tile) block
    # out_ref: [C_in, C_in+1]  fused per-tile input moments:
    #            [:, :C_in] = Gram = x_valid @ x_valid.T   (f32 accumulation)
    #            [:,  C_in] = per-channel sum of x_valid   (f32)
    tl = x_ref.shape[-1]
    x = x_ref[...]
    # Mask lanes past the true sequence length: the boundary tile's OOB lanes hold
    # undefined data, so use a select (not a multiply) to avoid NaN/Inf propagation.
    col = jax.lax.broadcasted_iota(jnp.int32, (1, tl), 1) + pl.program_id(1) * tl
    xm = jnp.where(col < length, x, jnp.zeros_like(x)).astype(jnp.float32)
    xc = xm.astype(compute_dtype)  # bf16 operands for the MXU; accumulation stays f32
    gram = jax.lax.dot_general(
        xc, xc, (((1,), (1,)), ((), ())), preferred_element_type=jnp.float32)
    out_ref[:, :c_in] = gram
    out_ref[:, c_in:c_in + 1] = jnp.sum(xm, axis=1, keepdims=True)


def _apply_kernel(x_ref, w_ref, shift_ref, o_ref, *, compute_dtype):
    # x_ref:     [C_in, TL]     activation tile
    # w_ref:     [C_out, C_in]  BN-scale-folded conv weight (constant index_map -> resident)
    # shift_ref: [C_out, 1]     folded BN shift, f32 (resident)
    # o_ref:     [C_out, TL]    output tile written directly in NCL layout
    y = jnp.dot(w_ref[...], x_ref[...].astype(compute_dtype),
                preferred_element_type=jnp.float32)
    o_ref[...] = (y + shift_ref[...]).astype(o_ref.dtype)


def ap_downsample(x_ncl, pooling_mask, conv_w, gamma, beta, *,
                  lane_tile=None, compute_dtype=jnp.bfloat16):
    """Forward pass of APDownsample.

    Args:
      x_ncl:         [N, C_in, L] activations (PyTorch Conv1d layout).
      pooling_mask:  unused (IrregularDownsample2d with number_pools=0 is the identity).
      conv_w:        [C_out, C_in] or [C_out, C_in, 1] Conv1d weight (kernel_size=1).
      gamma, beta:   [C_out] BatchNorm1d affine parameters.
      lane_tile:     optional override of the lane-tile size (128-multiple).
      compute_dtype: MXU operand dtype (bf16 default; statistics always accumulate in f32).
    Returns:
      [N, C_out, L] array of x_ncl's dtype.
    """
    del pooling_mask  # TODO(synk): IrregularDownsample2d unavailable; identity for 0 pools.
    n, c_in, length = x_ncl.shape
    c_out = conv_w.shape[0]
    conv_w = conv_w.reshape(c_out, c_in).astype(jnp.float32)
    gamma = gamma.astype(jnp.float32)
    beta = beta.astype(jnp.float32)

    vmem_budget = _vmem_limit_bytes()
    tl = _pick_lane_tile(length, c_in, c_out, x_ncl.dtype.itemsize, vmem_budget, lane_tile)
    n_lt = pl.cdiv(length, tl)
    cparams = pltpu.CompilerParams(
        dimension_semantics=("parallel", "parallel"),
        vmem_limit_bytes=vmem_budget,
    )

    # ---- pass 1: per-tile input moments (Gram + channel sums), fully parallel grid ----
    parts = pl.pallas_call(
        functools.partial(_stats_kernel, length=length, c_in=c_in,
                          compute_dtype=compute_dtype),
        out_shape=jax.ShapeDtypeStruct((n, n_lt, c_in, c_in + 1), jnp.float32),
        grid=(n, n_lt),
        in_specs=[pl.BlockSpec((None, c_in, tl), lambda b, l: (b, 0, l))],
        out_specs=pl.BlockSpec((None, None, c_in, c_in + 1), lambda b, l: (b, l, 0, 0)),
        compiler_params=cparams,
    )(x_ncl)

    # Tiny f32 reduction + BN folding in the wrapper (all O(C^2), no pass over x).
    tot = jnp.sum(parts, axis=(0, 1))                    # [C_in, C_in+1]
    gram = tot[:, :c_in]                                 # sum_j x x^T
    sum_x = tot[:, c_in]                                 # sum_j x
    nl = n * length                                      # true element count (no padding)
    mean = (conv_w @ sum_x) / nl                         # E[y]   per channel
    ey2 = jnp.sum((conv_w @ gram) * conv_w, axis=1) / nl  # E[y^2] per channel
    var = jnp.maximum(ey2 - mean * mean, 0.0)            # biased (training-mode) variance
    inv_std = jax.lax.rsqrt(var + _BN_EPS)
    scale = gamma * inv_std
    shift = (beta - mean * scale).reshape(c_out, 1)                 # stays f32
    w_scaled = (conv_w * scale[:, None]).astype(compute_dtype)      # fold BN scale into conv

    # ---- pass 2: fused 1x1 conv + folded BN, lane-dense NCL output ----
    # Weight / shift index_maps are constant, so those blocks stay resident across the grid.
    y = pl.pallas_call(
        functools.partial(_apply_kernel, compute_dtype=compute_dtype),
        out_shape=jax.ShapeDtypeStruct((n, c_out, length), x_ncl.dtype),
        grid=(n, n_lt),
        in_specs=[
            pl.BlockSpec((None, c_in, tl), lambda b, l: (b, 0, l)),
            pl.BlockSpec((c_out, c_in), lambda b, l: (0, 0)),
            pl.BlockSpec((c_out, 1), lambda b, l: (0, 0)),
        ],
        out_specs=pl.BlockSpec((None, c_out, tl), lambda b, l: (b, 0, l)),
        compiler_params=cparams,
    )(x_ncl, w_scaled, shift)
    return y


def _reference(x_ncl, conv_w, gamma, beta):
    # Pure-JAX reference: 1x1 Conv1d (no bias) + BatchNorm1d (training-mode batch stats).
    w2 = conv_w.reshape(conv_w.shape[0], -1)
    y = jnp.einsum("oc,ncl->nol", w2, x_ncl)
    mean = jnp.mean(y, axis=(0, 2), keepdims=True)
    var = jnp.mean((y - mean) ** 2, axis=(0, 2), keepdims=True)
    y_hat = (y - mean) * jax.lax.rsqrt(var + _BN_EPS)
    return y_hat * gamma[None, :, None] + beta[None, :, None]


if __name__ == "__main__":
    key = jax.random.PRNGKey(0)
    kx, kw, kg, kb, kx2 = jax.random.split(key, 5)

    # Module config: inplanes=4, planes=2, expansion=4 -> out channels = 8
    N, INPLANES, L = 2, 4, 16
    PLANES, EXPANSION = 2, 4
    C_OUT = PLANES * EXPANSION

    x = jax.random.normal(kx, (N, INPLANES, L), dtype=jnp.float32)
    pooling_mask = jnp.ones((N, L), dtype=jnp.float32)  # unused (identity downsample)
    conv_w = jax.random.normal(kw, (C_OUT, INPLANES, 1), dtype=jnp.float32) * 0.1
    gamma = 1.0 + 0.05 * jax.random.normal(kg, (C_OUT,), dtype=jnp.float32)
    beta = 0.05 * jax.random.normal(kb, (C_OUT,), dtype=jnp.float32)
    ref = _reference(x, conv_w, gamma, beta)

    # Test 1a: short-sequence path (single full-length block), exact f32 compute path.
    out = jax.block_until_ready(
        ap_downsample(x, pooling_mask, conv_w, gamma, beta, compute_dtype=jnp.float32))
    assert out.shape == (N, C_OUT, L), out.shape
    assert jnp.allclose(out, ref, atol=2e-4, rtol=2e-4), float(jnp.max(jnp.abs(out - ref)))

    # Test 1b: default bf16 MXU path (f32 accumulation / f32 BN statistics).
    out_bf = jax.block_until_ready(ap_downsample(x, pooling_mask, conv_w, gamma, beta))
    assert out_bf.shape == (N, C_OUT, L), out_bf.shape
    assert jnp.allclose(out_bf, ref, atol=3e-2, rtol=3e-2), float(jnp.max(jnp.abs(out_bf - ref)))

    # Test 2: tiled/pipelined path with L not a multiple of the lane tile
    # (exercises in-kernel tail masking and dropped out-of-bounds output columns).
    L2 = 1000
    x2 = jax.random.normal(kx2, (N, INPLANES, L2), dtype=jnp.float32)
    mask2 = jnp.ones((N, L2), dtype=jnp.float32)
    out2 = jax.block_until_ready(
        ap_downsample(x2, mask2, conv_w, gamma, beta, lane_tile=256))
    ref2 = _reference(x2, conv_w, gamma, beta)
    assert out2.shape == (N, C_OUT, L2), out2.shape
    assert jnp.allclose(out2, ref2, atol=3e-2, rtol=3e-2), float(jnp.max(jnp.abs(out2 - ref2)))

    print("KERNEL_OK")
</pallas_src>

<mosaic_0001>
module attributes {stable_mosaic.version = 11 : i64} {
  func.func @_stats_kernel(%arg0: i32, %arg1: i32, %arg2: memref<1x4x16xf32, #tpu.memory_space<vmem>>, %arg3: memref<1x1x4x5xf32, #tpu.memory_space<vmem>>) attributes {dimension_semantics = [#tpu.dimension_semantics<parallel>, #tpu.dimension_semantics<parallel>], iteration_bounds = array<i64: 2, 1>, scalar_prefetch = 0 : i64, scratch_operands = 0 : i64, tpu.core_type = #tpu.core_type<tc>, window_params = [{transform_indices = @transform_0, window_bounds = array<i64: 1, 4, 16>}, {transform_indices = @transform_1, window_bounds = array<i64: 1, 1, 4, 5>}]} {
    %c0 = arith.constant 0 : index
    %c0_0 = arith.constant 0 : index
    %c0_1 = arith.constant 0 : index
    %0 = vector.load %arg2[%c0, %c0_0, %c0_1] : memref<1x4x16xf32, #tpu.memory_space<vmem>>, vector<1x4x16xf32>
    %1 = vector.shape_cast %0 : vector<1x4x16xf32> to vector<4x16xf32>
    %2 = tpu.iota {dimensions = array<i32: 1>} : vector<1x16xi32>
    %c16_i32 = arith.constant 16 : i32
    %3 = arith.muli %arg1, %c16_i32 : i32
    %4 = vector.broadcast %3 : i32 to vector<1x16xi32>
    %5 = arith.addi %2, %4 : vector<1x16xi32>
    %c16_i32_2 = arith.constant 16 : i32
    %6 = vector.broadcast %c16_i32_2 : i32 to vector<1x16xi32>
    %7 = arith.cmpi slt, %5, %6 : vector<1x16xi32>
    %cst = arith.constant 0.000000e+00 : f32
    %8 = vector.broadcast %cst : f32 to vector<4x16xf32>
    %9 = vector.shape_cast %7 : vector<1x16xi1> to vector<1x16xi1>
    %10 = vector.broadcast %9 : vector<1x16xi1> to vector<4x16xi1>
    %11 = arith.select %10, %1, %8 : vector<4x16xi1>, vector<4x16xf32>
    %cst_3 = arith.constant dense<0.000000e+00> : vector<4x4xf32>
    %12 = tpu.matmul %11, %11, %cst_3 {dimension_numbers = #tpu.dot_dimension_numbers<[1], [1], [0], [0], [0, 0, 1, 0], [], []>} : vector<4x16xf32>, vector<4x16xf32>, vector<4x4xf32> -> vector<4x4xf32>
    %c0_4 = arith.constant 0 : index
    %c0_5 = arith.constant 0 : index
    %c0_6 = arith.constant 0 : index
    %c0_7 = arith.constant 0 : index
    %13 = vector.load %arg3[%c0_4, %c0_5, %c0_6, %c0_7] : memref<1x1x4x5xf32, #tpu.memory_space<vmem>>, vector<1x1x4x4xf32>
    %14 = vector.shape_cast %13 : vector<1x1x4x4xf32> to vector<4x4xf32>
    %15 = vector.shape_cast %12 : vector<4x4xf32> to vector<1x1x4x4xf32>
    tpu.vector_store %arg3[%c0_4, %c0_5, %c0_6, %c0_7], %15 {strides = array<i32>} : memref<1x1x4x5xf32, #tpu.memory_space<vmem>>, vector<1x1x4x4xf32>,
    %cst_8 = arith.constant dense<0.000000e+00> : vector<4xf32>
    %16 = vector.multi_reduction <add>, %11, %cst_8 [1] : vector<4x16xf32> to vector<4xf32>
    %17 = vector.shape_cast %16 : vector<4xf32> to vector<4x1xf32>
    %c0_9 = arith.constant 0 : index
    %c0_10 = arith.constant 0 : index
    %c0_11 = arith.constant 0 : index
    %c4 = arith.constant 4 : index
    %18 = vector.load %arg3[%c0_9, %c0_10, %c0_11, %c4] : memref<1x1x4x5xf32, #tpu.memory_space<vmem>>, vector<1x1x4x1xf32>
    %19 = vector.shape_cast %18 : vector<1x1x4x1xf32> to vector<4x1xf32>
    %20 = vector.shape_cast %17 : vector<4x1xf32> to vector<1x1x4x1xf32>
    tpu.vector_store %arg3[%c0_9, %c0_10, %c0_11, %c4], %20 {strides = array<i32>} : memref<1x1x4x5xf32, #tpu.memory_space<vmem>>, vector<1x1x4x1xf32>,
    return
  }
  func.func @transform_0(%arg0: i32, %arg1: i32) -> (i32, i32, i32) {
    %c0_i32 = arith.constant 0 : i32
    %c0_i32_0 = arith.constant 0 : i32
    return %arg0, %c0_i32, %arg1 : i32, i32, i32
  }
  func.func @transform_1(%arg0: i32, %arg1: i32) -> (i32, i32, i32, i32) {
    %c0_i32 = arith.constant 0 : i32
    %c0_i32_0 = arith.constant 0 : i32
    %c0_i32_1 = arith.constant 0 : i32
    return %arg0, %arg1, %c0_i32, %c0_i32_0 : i32, i32, i32, i32
  }
}

</mosaic_0001>

<bundles_post_ra>
// kernel: tpu_custom_call.1
= control target key start
LH: loop header
LB: loop body
LE: loop exit
PB: predicated region body
PF: predicated region fallthrough
CT: control target
= control target key end

     0   :  { %6 = vsyncpa [#allocation3], 0  ;;  %s722_s0 = inlined_call_operand.hbm [shape: f32[2,4,16], index: 0, kind: input, shape index: {}]   ;;  %s723_s1 = inlined_call_operand.hbm [shape: f32[2,1,4,5], index: 1, kind: output, shape index: {}]  }
   0x1   :  { %8 = vsyncpa [#allocation3 + $0x1], 0 }
   0x2   :  { %9 = vsyncpa [#allocation4], 0 }
   0x3   :  { %11 = vsyncpa [#allocation4 + $0x1], 0  ;;  %s550_s6 = smov 0   ;;  %s552_s7 = smov 0  }
   0x4   :  { %s554_s8 = smov 0   ;;  %s556_s9 = smov 0  }
   0x5   :  { %s558_s10 = smov 0   ;;  %s560_s11 = smov 0  }
   0x6 LB: > { %s336_s12 = sadd.s32 4294967295, %s534_s11   ;;  %s337_s13 = sadd.s32 4294967294, %s534_s11   ;;  %s534_s11 = sphi %s560_s11, %s17_s11   ;;  %s530_s10 = sphi %s558_s10, %s739_s10   ;;  %s526_s9 = sphi %s556_s9, %s738_s9   ;;  %s522_s8 = sphi %s554_s8, %s737_s8   ;;  %s518_s7 = sphi %s552_s7, %s736_s7   ;;  %s514_s6 = sphi %s550_s6, %s735_s6  }
   0x7   : > { %s29_s14 = sadd.s32 1, %s530_s10  ;;  %s38_s15 = sadd.s32 1, %s522_s8 }
   0x8   : > { %p31_p0 = scmp.ge.s32.totalorder %s29_s14, 2  ;;  %p45_p1 = scmp.ne.s32.totalorder %s522_s8, %s518_s7 }
   0x9   : > { %p46_p2 = scmp.eq.s32.totalorder %s534_s11, 0  ;;  %p51_p3 = scmp.ne.s32.totalorder %s518_s7, %s514_s6 }
   0xa   : > { %s741_s14 = smov (%p31_p0, %s29_s14), 0  ;;  %p52_p5 = scmp.eq.s32.totalorder %s336_s12, 0 }
   0xb   : > { %p591_p4 = por %p46_p2, %p45_p1  ;;  %s33_s17 = ssub.s32 %s530_s10, %s741_s14 }
   0xc   : > { %p77_p6 = scmp.eq.s32.totalorder %s336_s12, 1  ;;  %p36_p7 = scmp.eq.s32.totalorder %s33_s17, 0 }
   0xd   : > { %p597_p8 = por %p52_p5, %p51_p3  ;;  %p83_p10 = scmp.eq.s32.totalorder %s337_s13, 1 }
   0xe   : > { %p601_p9 = por %p77_p6, %p45_p1  ;;  %p370_p13 = scmp.lt.s32.totalorder %s534_s11, 2 }
   0xf   : > { %s606_s20 = scalar_select %p36_p7, %s522_s8, %s38_s15  }
  0x10   : > { %s727_s19 = scalar_select %p601_p9, 1, 0 }
  0x11   : > { %p608_p11 = por %p83_p10, %p51_p3  ;;  %s103_s22 = sand.u32 1, %s522_s8  }
  0x12   : > { %s340_s23 = sshll.u32 %s103_s22, 2  ;;  %s341_s24 = sshll.u32 %s530_s10, 6 }
  0x13   : > { %s728_s21 = scalar_select %p608_p11, 1, 0 }
  0x14   : > { %s619_s27 = scalar_lea.hbm %s722_s0, %s341_s24  ;;  %s107_s28 = scalar_lea.vmem [#allocation2], %s340_s23 }
  0x15   : > { %s115_s29 = sshll.u32 %s107_s28, 4  ;;  %p625_p0 = pnand %p370_p13, %p591_p4  ;;  %s621_s29 = int_to_ptr.vmem [resolvable:$true] %s115_s29 }
  0x16   : > { %s104_s2 = scalar_lea.sflag [#allocation3], %s103_s22  ;;  %s422_s3 = scalar_lea.hbm %s619_s27, 64 }
  0x17   : > { %p423_p3 = scmp.ne.s32.totalorder %s619_s27, %s422_s3  ;;  %p424_p5 = pneg %p625_p0 }
  0x18   : > { %s427_s12 = scalar_lea.hbm %s722_s0, 128  ;;  %p428_p4 = scmp.lt.u32.totalorder %s619_s27, %s722_s0 }
  0x19   : > { %p425_p6 = pnand %p424_p5, %p423_p3  ;;  %p429_p10 = scmp.lt.u32.totalorder %s427_s12, %s422_s3 }
  0x1a   : > { %p431_p12 = scmp.lt.u32.totalorder %s422_s3, %s619_s27 }
  0x1b   : > { %p426_p7 = pneg %p425_p6  ;;  %p430_p13 = por %p429_p10, %p428_p4 }
  0x1d   : > { %p432_p1 = por %p431_p12, %p430_p13 }
  0x1f   : > { %p433_p2 = pnand %p432_p1, %p426_p7 }
  0x21   : > { %436 = shalt.err (!%p433_p2)
}
  0x22   : > { %s437_s16 = scalar_lea.vmem %s621_s29, 64  ;;  %s536_s17 = smov [#allocation2]  }
  0x23   : > { %p438_p3 = scmp.ne.s32.totalorder %s621_s29, %s437_s16  ;;  %s442_s22 = sshll.u32 %s536_s17, 4  ;;  %s443_s22 = int_to_ptr.vmem [resolvable:$false] %s442_s22 }
  0x24   : > { %s444_s23 = scalar_lea.vmem %s443_s22, 128  ;;  %p445_p9 = scmp.lt.s32.totalorder %s621_s29, %s443_s22 }
  0x25   : > { %p440_p6 = pnand %p438_p3, %p424_p5  ;;  %p446_p4 = scmp.lt.s32.totalorder %s444_s23, %s437_s16 }
  0x27   : > { %p441_p11 = pneg %p440_p6  ;;  %p447_p10 = por %p446_p4, %p445_p9 }
  0x29   : > { %p448_p12 = pnand %p447_p10, %p441_p11 }
  0x2b   : > { %451 = shalt.err (!%p448_p12)
}
  0x2c   : > { %365 = dma.hbm_to_vmem [thread:$0]  (!%p625_p0), %s619_s27, 64, %s621_s29, %s104_s2  }
  0x2d   : > { %p730_p1 = scmp.lt.s32.totalorder %s534_s11, 3  ;;  %p731_p2 = scmp.ge.s32.totalorder %s534_s11, 1 }
  0x2f   : > { %p121_p5 = pnand %p731_p2, %p730_p1 }
  0x30   : > { %s661_s24 = sand.u32 (!%p121_p5), 1, %s518_s7  }
  0x31   : > { %124 = sbr.rel (%p121_p5) target bundleno = 293 (0x125), region = 24  ;;  %s343_s25 = sshll.u32 (!%p121_p5), %s661_s24, 2 }
  0x32   : > { %s127_s26 = scalar_lea.sflag (!%p121_p5), [#allocation3], %s661_s24  ;;  %s130_s28 = scalar_lea.vmem (!%p121_p5), [#allocation2], %s343_s25 }
  0x38   : > { %505 = dma.done.wait (%p597_p8), %s127_s26, 64  }
  0x39   : > { %507 = vsyncadd (%p597_p8), %s127_s26, 4294967232  ;;  %v150_v0 = vlaneseq  ;;  %v537_v1 = vmov 0.0   ;;  %vm538_vm0 = vmmov 0   ;;  %vm159_vm2 = vcmask 130048   ;;  %v149_v3 = vld [vmem:[%s130_s28] sm:$0xf] }
  0x3a   : > { %353 = vmatprep.subr.mxu0 %v537_v1  ;;  %355 = vmatprep.mubr.msk.f32.mxu0 %vm538_vm0, %v537_v1  ;;  %vm235_vm3 = vcmask 125952   ;;  %s348_s18 = sshll.u32 %s526_s9, 6  ;;  %s148_s27 = scalar_lea.vmem [#allocation5], %s343_s25  ;;  %vm233_vm4 = vcmask 27648   ;;  %vm239_vm5 = vcmask 35872  }
  0x3b   : > { %v151_v2 = vand.u32 127, %v150_v0  ;;  %s256_s29 = sshll.u32 %s148_s27, 4  ;;  %s673_s3 = scalar_lea.hbm %s723_s1, %s348_s18  ;;  %s675_s29 = int_to_ptr.vmem [resolvable:$true] %s256_s29 }
  0x3c   : > { %s242_s9 = scalar_lea.sflag [#allocation4], %s661_s24  ;;  %s452_s4 = scalar_lea.vmem %s675_s29, 64 }
  0x3d   : > { %vm155_vm1 = vcmp.lt.s32.totalorder %v151_v2, 16  ;;  %p453_p8 = scmp.ne.s32.totalorder %s675_s29, %s452_s4  ;;  %p732_p9 = scmp.ne.s32.totalorder %s727_s19, 0 }
  0x3e   : > { %v158_v4 = vsel %vm155_vm1, %v149_v3, 0.0  ;;  %s539_s5 = smov [#allocation5]  }
  0x3f   : > { %354 = vmatpush3.xpose.msk.msra.mxu0 %vm159_vm2, %v158_v4  ;;  %v236_v5 = vsel %vm235_vm3, %v158_v4, 0.0  ;;  %p454_p11 = pnand %p453_p8, %p732_p9  ;;  %s456_s12 = sshll.u32 %s539_s5, 4  ;;  %s457_s12 = int_to_ptr.vmem [resolvable:$false] %s456_s12 }
  0x40   : > { %237 = vadd.xlane.f32.xlu0 %v236_v5  ;;  %s458_s13 = scalar_lea.vmem %s457_s12, 128  ;;  %p459_p7 = scmp.lt.s32.totalorder %s675_s29, %s457_s12 }
  0x41   : > { %p455_p0 = pneg %p454_p11  ;;  %p460_p13 = scmp.lt.s32.totalorder %s458_s13, %s452_s4 }
  0x42   : > { %356 = vmatmul.mubr.msk.f32.vlgmr.msra.gmra.mrb[0].mxu0 %vm159_vm2, %v158_v4 }
  0x43   : > { %p461_p3 = por %p460_p13, %p459_p7 }
  0x45   : > { %p462_p6 = pnand %p461_p3, %p455_p0 }
  0xcd   : > { %v238_v6 = vpop.xlane.xlu0 %237 }
 0x115   : > { %v229_v7 = vpop.f32.mrb[0].mxu0 }
 0x116   : > { %234 = vst.msk [vmem:[%s148_s27] sm:$0xf] %vm233_vm4, %v229_v7  ;;  %v357_v8 = vpop.f32.mrb[1].mxu0 }
 0x117   : > { %240 = vst.msk [vmem:[%s148_s27] sm:$0xf] %vm239_vm5, %v238_v6 }
 0x118   : > { %465 = shalt.err (!%p462_p6)
}
 0x119   : > { %s466_s15 = scalar_lea.hbm %s673_s3, 64  ;;  %s470_s22 = scalar_lea.hbm %s723_s1, 128 }
 0x11a   : > { %p467_p4 = scmp.ne.s32.totalorder %s673_s3, %s466_s15  ;;  %p471_p1 = scmp.lt.u32.totalorder %s673_s3, %s723_s1 }
 0x11b   : > { %p472_p2 = scmp.lt.u32.totalorder %s470_s22, %s466_s15  ;;  %p474_p8 = scmp.lt.u32.totalorder %s466_s15, %s673_s3 }
 0x11c   : > { %p468_p10 = pnand %p467_p4, %p732_p9 }
 0x11d   : > { %p473_p5 = por %p472_p2, %p471_p1 }
 0x11e   : > { %p469_p12 = pneg %p468_p10 }
 0x11f   : > { %p475_p11 = por %p474_p8, %p473_p5 }
 0x121   : > { %p476_p0 = pnand %p475_p11, %p469_p12 }
 0x123   : > { %479 = shalt.err (!%p476_p0)
}
 0x124   : > { %360 = dma.vmem_to_hbm [thread:$0]  (%p732_p9), %s675_s29, 64, %s673_s3, %s242_s9  }
 0x125 PF: > { %s268_s25 = sand.u32 1, %s514_s6   ;;  %p733_p7 = scmp.ne.s32.totalorder %s728_s21, 0 }
 0x126   : > { %p734_p13 = scmp.ge.s32.totalorder %s534_s11, 2  ;;  %s269_s26 = scalar_lea.sflag [#allocation4], %s268_s25 }
 0x128   : > { %p367_p3 = pnand %p734_p13, %p733_p7 }
 0x12a   : > { %509 = dma.done.wait (!%p367_p3), %s269_s26, 64  }
 0x12b   : > { %511 = vsyncadd (!%p367_p3), %s269_s26, 4294967232  ;;  %s17_s11 = sadd.s32 1, %s534_s11   ;;  %s735_s6 = smov %s518_s7 }
 0x12c   : > { %p14_p6 = scmp.ge.s32.totalorder %s17_s11, 4   ;;  %s736_s7 = smov %s522_s8 }
 0x12d   : > { %s737_s8 = smov %s606_s20  ;;  %s738_s9 = smov %s530_s10 }
 0x12e   : > { %s739_s10 = smov %s741_s14  ;;  %16 = sbr.rel (!%p14_p6) target bundleno = 6 (0x6), region = 69 }
 0x135   :  { %274 = vsyncpa [#allocation3], 1 }
 0x136   :  { %276 = vsyncpa [#allocation3 + $0x1], 1 }
 0x137   :  { %277 = vsyncpa [#allocation4], 1 }
 0x138   :  { %279 = vsyncpa [#allocation4 + $0x1], 1 }

</bundles_post_ra>
